<compile_context>
chip_gen: v7x
topology: tpu7x:2x2x1
jax: 0.10.0
libtpu: 0.0.40
codegen_flags: <defaults>
</compile_context>

<pallas_src>
import functools

import jax
import jax.numpy as jnp
from jax.experimental import pallas as pl
from jax.experimental.pallas import tpu as pltpu


def _round_up(n, m):
    return (n + m - 1) // m * m


def _prefer_split_w2():
    # v5 MXUs are 128x128: the fused 256x256 block-diagonal W2 dot wastes half
    # its passes on zero blocks there, so split it into two 128-K dots.
    try:
        kind = jax.devices()[0].device_kind.lower()
    except Exception:  # interpret mode / no device info
        return False
    return "v5" in kind


# ---------------------------------------------------------------------------
# Kernel: one batch tile -> fused head [B_TILE, 128] (f32)
#   column 0      : value
#   columns 1..A  : advantages
#   columns A+1.. : zero padding (W4 / b4 padded with zeros)
# ---------------------------------------------------------------------------
def dueling_q_kernel(x_ref, w1_ref, w2_ref, w4_ref, b_ref, head_ref, *, split_w2):
    h1w = w1_ref.shape[1]            # 2 * hide_size_1
    h2w = w2_ref.shape[1]            # 2 * hide_size_2
    ow = w4_ref.shape[1]             # padded head width (multiple of 128)
    h1 = h1w // 2
    h2 = h2w // 2

    # Packed biases (f32); static, 128-aligned slices -> zero-cost views.
    b1 = b_ref[:, 0:h1w]
    b2 = b_ref[:, h1w:h1w + h2w]
    b4 = b_ref[:, h1w + h2w:h1w + h2w + ow]

    # f32 -> bf16 cast in-kernel (saves the host-side cast's HBM round trip).
    x = x_ref[...].astype(w1_ref.dtype)                         # bf16 [Bt, S]
    h = jnp.dot(x, w1_ref[...], preferred_element_type=jnp.float32) + b1
    h = jnp.maximum(h, 0.0).astype(w2_ref.dtype)                # bf16 [Bt, 2*h1]

    if split_w2:
        # v5e path: two 128-K dots, skipping the zero blocks of W2; W4 split
        # as well to avoid a lane concat.
        gv = jnp.dot(h[:, 0:h1], w2_ref[0:h1, 0:h2],
                     preferred_element_type=jnp.float32) + b2[:, 0:h2]
        ga = jnp.dot(h[:, h1:h1w], w2_ref[h1:h1w, h2:h2w],
                     preferred_element_type=jnp.float32) + b2[:, h2:h2w]
        gv = jnp.maximum(gv, 0.0).astype(w4_ref.dtype)
        ga = jnp.maximum(ga, 0.0).astype(w4_ref.dtype)
        head = (jnp.dot(gv, w4_ref[0:h2, :], preferred_element_type=jnp.float32)
                + jnp.dot(ga, w4_ref[h2:h2w, :], preferred_element_type=jnp.float32)
                + b4)
    else:
        # v6e / v7x path: fused 256-wide dots fill the 256x256 MXU.
        g = jnp.dot(h, w2_ref[...], preferred_element_type=jnp.float32) + b2
        g = jnp.maximum(g, 0.0).astype(w4_ref.dtype)            # bf16 [Bt, 2*h2]
        head = jnp.dot(g, w4_ref[...], preferred_element_type=jnp.float32) + b4

    head_ref[...] = head.astype(head_ref.dtype)                 # f32 [Bt, ow]


# ---------------------------------------------------------------------------
# Wrapper
# ---------------------------------------------------------------------------
def dueling_q_forward(x, packed, action_size, *, b_tile=None, split_w2=None):
    """x: [B, state_size] float32. packed: dict from pack_params()."""
    B, S = x.shape
    w1, w2, w4, b = packed["w1"], packed["w2"], packed["w4"], packed["b"]
    ow = w4.shape[1]
    h1 = w1.shape[1] // 2
    h2 = w2.shape[1] // 2

    if split_w2 is None:
        split_w2 = _prefer_split_w2()

    # Batch tile: multiple of 16 (bf16 sublane packing), capped at 2048, and
    # sized so the grid has >= 2 steps whenever the batch allows it (v7x
    # megacore sharding of the "parallel" batch axis).
    if b_tile is None:
        b_tile = max(16, min(2048, _round_up(-(-B // 2), 16)))
    else:
        b_tile = max(16, _round_up(b_tile, 16))
    nb = -(-B // b_tile)              # ragged last tile handled by Pallas masking

    # Only the non-zero blocks of the fused weights do real MXU work.
    flops = 2 * B * (S * 2 * h1 + 2 * h1 * h2 + h2 * (1 + action_size))
    bytes_accessed = int(
        x.size * x.dtype.itemsize
        + w1.size * w1.dtype.itemsize
        + w2.size * w2.dtype.itemsize
        + w4.size * w4.dtype.itemsize
        + b.size * b.dtype.itemsize
        + B * ow * 4)

    weight_bytes = (w1.size * w1.dtype.itemsize + w2.size * w2.dtype.itemsize
                    + w4.size * w4.dtype.itemsize + b.size * b.dtype.itemsize)
    tile_bytes = 2 * (b_tile * S * x.dtype.itemsize + b_tile * ow * 4)  # dbl-buffered
    cp_kwargs = dict(dimension_semantics=("parallel",))
    if weight_bytes + tile_bytes > (12 << 20):
        # Only needed for very large user-requested tiles (v5e default scoped
        # VMEM limit is 16 MiB); keep headroom, never exceed ~100 MiB.
        cp_kwargs["vmem_limit_bytes"] = min(
            int(1.5 * (weight_bytes + tile_bytes)) + (4 << 20), 100 << 20)

    head = pl.pallas_call(
        functools.partial(dueling_q_kernel, split_w2=split_w2),
        out_shape=jax.ShapeDtypeStruct((B, ow), jnp.float32),
        grid=(nb,),
        in_specs=[
            pl.BlockSpec((b_tile, S), lambda i: (i, 0)),   # x tile (pipelined)
            pl.BlockSpec(w1.shape, lambda i: (0, 0)),      # pinned weights
            pl.BlockSpec(w2.shape, lambda i: (0, 0)),
            pl.BlockSpec(w4.shape, lambda i: (0, 0)),
            pl.BlockSpec(b.shape, lambda i: (0, 0)),       # packed biases
        ],
        out_specs=pl.BlockSpec((b_tile, ow), lambda i: (i, 0)),
        compiler_params=pltpu.CompilerParams(**cp_kwargs),
        cost_estimate=pl.CostEstimate(
            flops=flops, transcendentals=0, bytes_accessed=bytes_accessed),
    )(x, w1, w2, w4, b)

    val = head[:, :1]
    adv = head[:, 1:1 + action_size]
    # torch: `val + adv - adv.mean()` -> GLOBAL mean over the whole [B, A]
    # tensor (couples every batch tile, so it stays a tiny JAX epilogue).
    return val + adv - jnp.mean(adv)


# ---------------------------------------------------------------------------
# Parameter init (PyTorch nn.Linear default init) and host-side fusion/packing
# ---------------------------------------------------------------------------
def init_params(key, state_size, action_size, h1=128, h2=128):
    """Weights stored pre-transposed as [in, out]; biases as [1, out]."""
    def linear(k, fan_in, fan_out):
        kw, kb = jax.random.split(k)
        bound = 1.0 / jnp.sqrt(float(fan_in))
        w = jax.random.uniform(kw, (fan_in, fan_out), jnp.float32, -bound, bound)
        bb = jax.random.uniform(kb, (1, fan_out), jnp.float32, -bound, bound)
        return w, bb

    keys = jax.random.split(key, 6)
    p = {}
    p["w1v"], p["b1v"] = linear(keys[0], state_size, h1)
    p["w2v"], p["b2v"] = linear(keys[1], h1, h2)
    p["w4v"], p["b4v"] = linear(keys[2], h2, 1)
    p["w1a"], p["b1a"] = linear(keys[3], state_size, h1)
    p["w2a"], p["b2a"] = linear(keys[4], h1, h2)
    p["w4a"], p["b4a"] = linear(keys[5], h2, action_size)
    return p


def pack_params(p, compute_dtype=jnp.bfloat16):
    """Fuse the two streams into 3 wide matmuls + one packed bias vector."""
    h1 = p["w1v"].shape[1]
    h2 = p["w2v"].shape[1]
    A = p["w4a"].shape[1]
    ow = max(128, _round_up(1 + A, 128))   # lane-dense head width

    w1 = jnp.concatenate([p["w1v"], p["w1a"]], axis=1)          # [S, 2*h1]
    b1 = jnp.concatenate([p["b1v"], p["b1a"]], axis=1)          # [1, 2*h1]

    z = jnp.zeros((h1, h2), jnp.float32)
    w2 = jnp.concatenate([
        jnp.concatenate([p["w2v"], z], axis=1),
        jnp.concatenate([z, p["w2a"]], axis=1),
    ], axis=0)                                                  # [2*h1, 2*h2]
    b2 = jnp.concatenate([p["b2v"], p["b2a"]], axis=1)          # [1, 2*h2]

    w4 = jnp.zeros((2 * h2, ow), jnp.float32)
    w4 = w4.at[:h2, 0:1].set(p["w4v"])
    w4 = w4.at[h2:, 1:1 + A].set(p["w4a"])                      # [2*h2, ow]
    b4 = jnp.zeros((1, ow), jnp.float32)
    b4 = b4.at[:, 0:1].set(p["b4v"])
    b4 = b4.at[:, 1:1 + A].set(p["b4a"])

    biases = jnp.concatenate([b1, b2, b4], axis=1).astype(jnp.float32)
    return {
        "w1": w1.astype(compute_dtype),
        "w2": w2.astype(compute_dtype),
        "w4": w4.astype(compute_dtype),
        "b": biases,
    }


# ---------------------------------------------------------------------------
# Pure-JAX reference (unfused weights, same bf16-input / f32-accum numerics)
# ---------------------------------------------------------------------------
def reference_forward(x, p, compute_dtype=jnp.bfloat16):
    def lin(h, w, bb):
        return jnp.dot(h.astype(compute_dtype), w.astype(compute_dtype),
                       preferred_element_type=jnp.float32) + bb
    relu = jax.nn.relu
    val = relu(lin(x, p["w1v"], p["b1v"]))
    val = relu(lin(val, p["w2v"], p["b2v"]))
    val = lin(val, p["w4v"], p["b4v"])
    adv = relu(lin(x, p["w1a"], p["b1a"]))
    adv = relu(lin(adv, p["w2a"], p["b2a"]))
    adv = lin(adv, p["w4a"], p["b4a"])
    return val + adv - jnp.mean(adv)


if __name__ == "__main__":
    key = jax.random.PRNGKey(0)
    kx, kp, kx2 = jax.random.split(key, 3)

    state_size = 32
    action_size = 4

    params = init_params(kp, state_size, action_size)
    packed = pack_params(params)

    # --- small batch (single partial tile, grid = 1) ------------------------
    batch = 2
    x = jax.random.normal(kx, (batch, state_size), jnp.float32)
    out = dueling_q_forward(x, packed, action_size)
    out = jax.block_until_ready(out)
    ref = reference_forward(x, params)
    assert out.shape == (batch, action_size)
    assert jnp.allclose(out, ref, atol=5e-3, rtol=5e-3), (out, ref)

    # --- larger batch: ragged pipelined grid (200 = 3*64 + 8) --------------
    batch2 = 200
    x2 = jax.random.normal(kx2, (batch2, state_size), jnp.float32)
    out2 = dueling_q_forward(x2, packed, action_size, b_tile=64)  # grid = 4
    out2 = jax.block_until_ready(out2)
    ref2 = reference_forward(x2, params)
    assert out2.shape == (batch2, action_size)
    assert jnp.allclose(out2, ref2, atol=5e-3, rtol=5e-3)

    # --- default tile selection (>= 2 grid steps) + forced v5e split path ---
    out3 = jax.block_until_ready(dueling_q_forward(x2, packed, action_size))
    assert jnp.allclose(out3, ref2, atol=5e-3, rtol=5e-3)
    out4 = jax.block_until_ready(
        dueling_q_forward(x2, packed, action_size, split_w2=True))
    assert jnp.allclose(out4, ref2, atol=5e-3, rtol=5e-3)

    print("KERNEL_OK")
</pallas_src>

<mosaic_0001>
module attributes {stable_mosaic.version = 11 : i64} {
  func.func @dueling_q_kernel(%arg0: i32, %arg1: memref<16x32xf32, #tpu.memory_space<vmem>>, %arg2: memref<32x256xbf16, #tpu.memory_space<vmem>>, %arg3: memref<256x256xbf16, #tpu.memory_space<vmem>>, %arg4: memref<256x128xbf16, #tpu.memory_space<vmem>>, %arg5: memref<1x640xf32, #tpu.memory_space<vmem>>, %arg6: memref<16x128xf32, #tpu.memory_space<vmem>>) attributes {dimension_semantics = [#tpu.dimension_semantics<parallel>], iteration_bounds = array<i64: 1>, scalar_prefetch = 0 : i64, scratch_operands = 0 : i64, tpu.core_type = #tpu.core_type<tc>, window_params = [{transform_indices = @transform_0, window_bounds = array<i64: 16, 32>}, {pipeline_mode = #tpu.pipeline_mode<synchronous>, transform_indices = @transform_1, window_bounds = array<i64: 32, 256>}, {pipeline_mode = #tpu.pipeline_mode<synchronous>, transform_indices = @transform_2, window_bounds = array<i64: 256, 256>}, {pipeline_mode = #tpu.pipeline_mode<synchronous>, transform_indices = @transform_3, window_bounds = array<i64: 256, 128>}, {pipeline_mode = #tpu.pipeline_mode<synchronous>, transform_indices = @transform_4, window_bounds = array<i64: 1, 640>}, {transform_indices = @transform_5, window_bounds = array<i64: 16, 128>}]} {
    %c0 = arith.constant 0 : index
    %c0_0 = arith.constant 0 : index
    %0 = vector.load %arg5[%c0, %c0_0] : memref<1x640xf32, #tpu.memory_space<vmem>>, vector<1x256xf32>
    %c0_1 = arith.constant 0 : index
    %c256 = arith.constant 256 : index
    %1 = vector.load %arg5[%c0_1, %c256] : memref<1x640xf32, #tpu.memory_space<vmem>>, vector<1x256xf32>
    %c0_2 = arith.constant 0 : index
    %c512 = arith.constant 512 : index
    %2 = vector.load %arg5[%c0_2, %c512] : memref<1x640xf32, #tpu.memory_space<vmem>>, vector<1x128xf32>
    %c0_3 = arith.constant 0 : index
    %c0_4 = arith.constant 0 : index
    %3 = vector.load %arg1[%c0_3, %c0_4] : memref<16x32xf32, #tpu.memory_space<vmem>>, vector<16x32xf32>
    %4 = arith.truncf %3 : vector<16x32xf32> to vector<16x32xbf16>
    %c0_5 = arith.constant 0 : index
    %c0_6 = arith.constant 0 : index
    %5 = vector.load %arg2[%c0_5, %c0_6] : memref<32x256xbf16, #tpu.memory_space<vmem>>, vector<32x256xbf16>
    %cst = arith.constant dense<0.000000e+00> : vector<16x256xf32>
    %6 = tpu.matmul %4, %5, %cst {dimension_numbers = #tpu.dot_dimension_numbers<[1], [0], [0], [1], [0, 0, 1, 1], [], []>} : vector<16x32xbf16>, vector<32x256xbf16>, vector<16x256xf32> -> vector<16x256xf32>
    %7 = vector.broadcast %0 : vector<1x256xf32> to vector<16x256xf32>
    %8 = arith.addf %6, %7 : vector<16x256xf32>
    %cst_7 = arith.constant 0.000000e+00 : f32
    %9 = vector.broadcast %cst_7 : f32 to vector<16x256xf32>
    %10 = arith.maximumf %8, %9 : vector<16x256xf32>
    %11 = arith.truncf %10 : vector<16x256xf32> to vector<16x256xbf16>
    %c0_8 = arith.constant 0 : index
    %c0_9 = arith.constant 0 : index
    %12 = vector.load %arg3[%c0_8, %c0_9] : memref<256x256xbf16, #tpu.memory_space<vmem>>, vector<256x256xbf16>
    %cst_10 = arith.constant dense<0.000000e+00> : vector<16x256xf32>
    %13 = tpu.matmul %11, %12, %cst_10 {dimension_numbers = #tpu.dot_dimension_numbers<[1], [0], [0], [1], [0, 0, 1, 1], [], []>} : vector<16x256xbf16>, vector<256x256xbf16>, vector<16x256xf32> -> vector<16x256xf32>
    %14 = vector.broadcast %1 : vector<1x256xf32> to vector<16x256xf32>
    %15 = arith.addf %13, %14 : vector<16x256xf32>
    %cst_11 = arith.constant 0.000000e+00 : f32
    %16 = vector.broadcast %cst_11 : f32 to vector<16x256xf32>
    %17 = arith.maximumf %15, %16 : vector<16x256xf32>
    %18 = arith.truncf %17 : vector<16x256xf32> to vector<16x256xbf16>
    %c0_12 = arith.constant 0 : index
    %c0_13 = arith.constant 0 : index
    %19 = vector.load %arg4[%c0_12, %c0_13] : memref<256x128xbf16, #tpu.memory_space<vmem>>, vector<256x128xbf16>
    %cst_14 = arith.constant dense<0.000000e+00> : vector<16x128xf32>
    %20 = tpu.matmul %18, %19, %cst_14 {dimension_numbers = #tpu.dot_dimension_numbers<[1], [0], [0], [1], [0, 0, 1, 1], [], []>} : vector<16x256xbf16>, vector<256x128xbf16>, vector<16x128xf32> -> vector<16x128xf32>
    %21 = vector.broadcast %2 : vector<1x128xf32> to vector<16x128xf32>
    %22 = arith.addf %20, %21 : vector<16x128xf32>
    %c0_15 = arith.constant 0 : index
    %c0_16 = arith.constant 0 : index
    %23 = vector.load %arg6[%c0_15, %c0_16] : memref<16x128xf32, #tpu.memory_space<vmem>>, vector<16x128xf32>
    tpu.vector_store %arg6[%c0_15, %c0_16], %22 {strides = array<i32>} : memref<16x128xf32, #tpu.memory_space<vmem>>, vector<16x128xf32>,
    return
  }
  func.func @transform_0(%arg0: i32) -> (i32, i32) {
    %c0_i32 = arith.constant 0 : i32
    %c0_i32_0 = arith.constant 0 : i32
    return %arg0, %c0_i32 : i32, i32
  }
  func.func @transform_1(%arg0: i32) -> (i32, i32) {
    %c0_i32 = arith.constant 0 : i32
    %c0_i32_0 = arith.constant 0 : i32
    %c0_i32_1 = arith.constant 0 : i32
    return %c0_i32, %c0_i32_0 : i32, i32
  }
  func.func @transform_2(%arg0: i32) -> (i32, i32) {
    %c0_i32 = arith.constant 0 : i32
    %c0_i32_0 = arith.constant 0 : i32
    %c0_i32_1 = arith.constant 0 : i32
    return %c0_i32, %c0_i32_0 : i32, i32
  }
  func.func @transform_3(%arg0: i32) -> (i32, i32) {
    %c0_i32 = arith.constant 0 : i32
    %c0_i32_0 = arith.constant 0 : i32
    %c0_i32_1 = arith.constant 0 : i32
    return %c0_i32, %c0_i32_0 : i32, i32
  }
  func.func @transform_4(%arg0: i32) -> (i32, i32) {
    %c0_i32 = arith.constant 0 : i32
    %c0_i32_0 = arith.constant 0 : i32
    %c0_i32_1 = arith.constant 0 : i32
    return %c0_i32, %c0_i32_0 : i32, i32
  }
  func.func @transform_5(%arg0: i32) -> (i32, i32) {
    %c0_i32 = arith.constant 0 : i32
    %c0_i32_0 = arith.constant 0 : i32
    return %arg0, %c0_i32 : i32, i32
  }
}

</mosaic_0001>

<bundles_post_ra>
// kernel: tpu_custom_call.1
= control target key start
LH: loop header
LB: loop body
LE: loop exit
PB: predicated region body
PF: predicated region fallthrough
CT: control target
= control target key end

     0   :  { %10 = vsyncpa [#allocation3], 0  ;;  %s1025_s0 = inlined_call_operand.hbm [shape: f32[2,32], index: 0, kind: input, shape index: {}]   ;;  %s1026_s1 = inlined_call_operand.hbm [shape: bf16[32,256], index: 1, kind: input, shape index: {}]   ;;  %s1027_s2 = inlined_call_operand.hbm [shape: bf16[256,256], index: 2, kind: input, shape index: {}]   ;;  %s1028_s3 = inlined_call_operand.hbm [shape: bf16[256,128], index: 3, kind: input, shape index: {}]   ;;  %s1029_s4 = inlined_call_operand.vmem [shape: f32[1,640], index: 4, kind: input, shape index: {}]   ;;  %s1030_s5 = inlined_call_operand.hbm [shape: f32[2,128], index: 5, kind: output, shape index: {}]  }
   0x1   :  { %11 = vsyncpa [#allocation6], 0 }
   0x2   :  { %12 = vsyncpa [#allocation9], 0 }
   0x3   :  { %13 = vsyncpa [#allocation4], 0 }
   0x4   :  { %18 = vsyncadd [#allocation3], 224  ;;  %s895_s18 = smov [#allocation5]   ;;  %s777_s22 = scalar_lea.hbm %s1026_s1, 512 }
   0x5   :  { %s31_s19 = sshll.u32 %s895_s18, 4  ;;  %p778_p0 = scmp.ne.s32.totalorder %s1026_s1, %s777_s22  ;;  %s32_s19 = int_to_ptr.vmem [resolvable:$true] %s31_s19 }
   0x6   :  { %p781_p1 = scmp.lt.u32.totalorder %s777_s22, %s1026_s1 }
   0x8   :  { %p783_p2 = pnand %p781_p1, %p778_p0 }
   0xa   :  { %786 = shalt.err (!%p783_p2)
}
   0xb   :  { %s787_s27 = scalar_lea.vmem %s32_s19, 512  ;;  %p792_p4 = scmp.lt.s32.totalorder %s32_s19, %s32_s19 }
   0xc   :  { %p788_p3 = scmp.ne.s32.totalorder %s32_s19, %s787_s27  ;;  %p793_p5 = scmp.lt.s32.totalorder %s787_s27, %s787_s27 }
   0xe   :  { %p794_p6 = por %p793_p5, %p792_p4 }
  0x10   :  { %p795_p7 = pnand %p794_p6, %p788_p3 }
  0x12   :  { %798 = shalt.err (!%p795_p7)
}
  0x13   :  { %s896_s28 = smov 128   ;;  %s897_s29 = smov 8  }
  0x14   :  { %37 = dma.hbm_to_vmem [thread:$0]  %s1026_s1, 512, %s32_s19, [#allocation6], %s896_s28, %s896_s28, %s897_s29  }
  0x15   :  { %s898_s7 = smov [#allocation2]   ;;  %s799_s11 = scalar_lea.hbm %s1025_s0, 32 }
  0x16   :  { %s19_s8 = sshll.u32 %s898_s7, 4  ;;  %p800_p8 = scmp.ne.s32.totalorder %s1025_s0, %s799_s11  ;;  %s20_s8 = int_to_ptr.vmem [resolvable:$true] %s19_s8 }
  0x17   :  { %p803_p9 = scmp.lt.u32.totalorder %s799_s11, %s1025_s0 }
  0x19   :  { %p805_p10 = pnand %p803_p9, %p800_p8 }
  0x1b   :  { %808 = shalt.err (!%p805_p10)
}
  0x1c   :  { %s809_s16 = scalar_lea.vmem %s20_s8, 32  ;;  %s813_s1 = scalar_lea.vmem %s20_s8, 256 }
  0x1d   :  { %p810_p11 = scmp.ne.s32.totalorder %s20_s8, %s809_s16  ;;  %p814_p12 = scmp.lt.s32.totalorder %s20_s8, %s20_s8 }
  0x1e   :  { %p815_p13 = scmp.lt.s32.totalorder %s813_s1, %s809_s16 }
  0x20   :  { %p816_p0 = por %p815_p13, %p814_p12 }
  0x22   :  { %p817_p1 = pnand %p816_p0, %p810_p11 }
  0x24   :  { %820 = shalt.err (!%p817_p1)
}
  0x25   :  { %s899_s17 = smov 32   ;;  %s900_s18 = smov 2  }
  0x26   :  { %25 = dma.hbm_to_vmem [thread:$0]  %s1025_s0, 32, %s20_s8, [#allocation3], %s899_s17, %s899_s17, %s900_s18  }
  0x27   :  { %s901_s21 = smov [#allocation7]   ;;  %s902_s23 = smov [#allocation8]  }
  0x28   :  { %s43_s22 = sshll.u32 %s901_s21, 4  ;;  %s55_s24 = sshll.u32 %s902_s23, 4  ;;  %s44_s22 = int_to_ptr.vmem [resolvable:$true] %s43_s22  ;;  %s967_s24 = int_to_ptr.vmem [resolvable:$true] %s55_s24 }
  0x29   :  { %s821_s27 = scalar_lea.hbm %s1027_s2, 4096 }
  0x2a   :  { %p822_p2 = scmp.ne.s32.totalorder %s1027_s2, %s821_s27  ;;  %p825_p3 = scmp.lt.u32.totalorder %s821_s27, %s1027_s2 }
  0x2c   :  { %p827_p4 = pnand %p825_p3, %p822_p2 }
  0x2e   :  { %830 = shalt.err (!%p827_p4)
}
  0x2f   :  { %s831_s0 = scalar_lea.vmem %s44_s22, 4096  ;;  %p836_p6 = scmp.lt.s32.totalorder %s44_s22, %s44_s22 }
  0x30   :  { %p832_p5 = scmp.ne.s32.totalorder %s44_s22, %s831_s0  ;;  %p837_p7 = scmp.lt.s32.totalorder %s831_s0, %s831_s0 }
  0x32   :  { %p838_p8 = por %p837_p7, %p836_p6 }
  0x34   :  { %p839_p9 = pnand %p838_p8, %p832_p5 }
  0x36   :  { %842 = shalt.err (!%p839_p9)
}
  0x37   :  { %49 = dma.hbm_to_vmem [thread:$0]  %s1027_s2, 4096, %s44_s22, [#allocation6], %s896_s28, %s896_s28, %s897_s29  }
  0x38   :  { %s843_s13 = scalar_lea.hbm %s1028_s3, 2048 }
  0x39   :  { %p844_p10 = scmp.ne.s32.totalorder %s1028_s3, %s843_s13  ;;  %p847_p11 = scmp.lt.u32.totalorder %s843_s13, %s1028_s3 }
  0x3b   :  { %p849_p12 = pnand %p847_p11, %p844_p10 }
  0x3d   :  { %852 = shalt.err (!%p849_p12)
}
  0x3e   :  { %s853_s19 = scalar_lea.vmem %s967_s24, 2048  ;;  %p858_p0 = scmp.lt.s32.totalorder %s967_s24, %s967_s24 }
  0x3f   :  { %p854_p13 = scmp.ne.s32.totalorder %s967_s24, %s853_s19  ;;  %p859_p1 = scmp.lt.s32.totalorder %s853_s19, %s853_s19 }
  0x41   :  { %p860_p2 = por %p859_p1, %p858_p0 }
  0x43   :  { %p861_p3 = pnand %p860_p2, %p854_p13 }
  0x45   :  { %864 = shalt.err (!%p861_p3)
}
  0x46   :  { %s903_s2 = smov 64   ;;  %s904_s28 = smov 4  }
  0x47   :  { %61 = dma.hbm_to_vmem [thread:$0]  %s1028_s3, 2048, %s967_s24, [#allocation9], %s903_s2, %s903_s2, %s904_s28  }
  0x48   :  { %887 = dma.done.wait [#allocation3], 256  }
  0x49   :  { %888 = vsyncadd [#allocation3], 4294967040 }
  0x4a   :  { %889 = dma.done.wait [#allocation6], 4608  }
  0x4b   :  { %890 = vsyncadd [#allocation6], 4294962688 }
  0x4c   :  { %891 = dma.done.wait [#allocation9], 2048  }
  0x4d   :  { %892 = vsyncadd [#allocation9], 4294965248  ;;  %v905_v0 = vmov 0   ;;  %v707_v1 = vld [vmem:[#allocation5 + $0x4] ss:$8 sps:$4 sm:$0xff]   ;;  %v80_v5 = vld [vmem:[#allocation2] sm:$0xff]  ;;  %v88_v51 = vlaneseq }
  0x4e   :  { %154 = vmatprep.mubr.bf16.mxu0 %v905_v0  ;;  %v709_v2 = vld [vmem:[#allocation5] ss:$8 sps:$4 sm:$0xff]   ;;  %122 = vmatprep.subr.bf16.mxu0 %v707_v1  ;;  %v710_v3 = vld [vmem:[#allocation5 + $0x14] ss:$8 sps:$4 sm:$0xff]   ;;  %v712_v4 = vld [vmem:[#allocation5 + $0x10] ss:$8 sps:$4 sm:$0xff]  }
  0x4f   :  { %123 = vmatpush1.bf16.msra.mxu0 %v709_v2  ;;  %v81_v6 = vld [vmem:[#allocation2 + $0x8] sm:$0xff]  ;;  %v713_v7 = vld [vmem:[#allocation7 + $0x4] ss:$8 sps:$4 sm:$0xff]   ;;  %v715_v8 = vld [vmem:[#allocation7] ss:$8 sps:$4 sm:$0xff]   ;;  %vm118_vm0 = vcmask 261120  }
  0x50   :  { %124 = vmatprep.subr.bf16.mxu0 %v710_v3  ;;  %v716_v9 = vld [vmem:[#allocation7 + $0x14] ss:$8 sps:$4 sm:$0xff]   ;;  %v82_v10 = vpack.c.bf16 %v81_v6, %v80_v5  ;;  %374 = vmatprep.subr.bf16.mxu1 %v713_v7  ;;  %v718_v11 = vld [vmem:[#allocation7 + $0x10] ss:$8 sps:$4 sm:$0xff]   ;;  %v719_v12 = vld [vmem:[#allocation7 + $0x24] ss:$8 sps:$4 sm:$0xff]  }
  0x51   :  { %375 = vmatpush1.bf16.msra.mxu1 %v715_v8  ;;  %v721_v13 = vld [vmem:[#allocation7 + $0x20] ss:$8 sps:$4 sm:$0xff]   ;;  %v722_v14 = vld [vmem:[#allocation7 + $0x34] ss:$8 sps:$4 sm:$0xff]   ;;  %v724_v15 = vld [vmem:[#allocation7 + $0x30] ss:$8 sps:$4 sm:$0xff]  }
  0x52   :  { %376 = vmatprep.subr.bf16.mxu1 %v716_v9  ;;  %v725_v16 = vld [vmem:[#allocation7 + $0x44] ss:$8 sps:$4 sm:$0xff]   ;;  %v727_v17 = vld [vmem:[#allocation7 + $0x40] ss:$8 sps:$4 sm:$0xff]   ;;  %v728_v18 = vld [vmem:[#allocation7 + $0x54] ss:$8 sps:$4 sm:$0xff]  }
  0x53   :  { %125 = vmatpush1.bf16.msra.mxu0 %v712_v4  ;;  %v730_v19 = vld [vmem:[#allocation7 + $0x50] ss:$8 sps:$4 sm:$0xff]   ;;  %v731_v20 = vld [vmem:[#allocation7 + $0x64] ss:$8 sps:$4 sm:$0xff]   ;;  %v733_v21 = vld [vmem:[#allocation7 + $0x60] ss:$8 sps:$4 sm:$0xff]  }
  0x54   :  { %v734_v22 = vld [vmem:[#allocation7 + $0x74] ss:$8 sps:$4 sm:$0xff]   ;;  %v736_v23 = vld [vmem:[#allocation7 + $0x70] ss:$8 sps:$4 sm:$0xff]   ;;  %v737_v24 = vld [vmem:[#allocation7 + $0x84] ss:$8 sps:$4 sm:$0xff]  }
  0x55   :  { %377 = vmatpush1.bf16.msra.mxu1 %v718_v11  ;;  %v739_v25 = vld [vmem:[#allocation7 + $0x80] ss:$8 sps:$4 sm:$0xff]   ;;  %v740_v26 = vld [vmem:[#allocation7 + $0x94] ss:$8 sps:$4 sm:$0xff]   ;;  %v742_v27 = vld [vmem:[#allocation7 + $0x90] ss:$8 sps:$4 sm:$0xff]  }
  0x56   :  { %623 = vmatmul.mubr.msk.bf16.vlgmr.msra.gmra.mrb[0].mxu0 %vm118_vm0, %v82_v10  ;;  %378 = vmatprep.subr.bf16.mxu1 %v719_v12  ;;  %v743_v28 = vld [vmem:[#allocation7 + $0xa4] ss:$8 sps:$4 sm:$0xff]   ;;  %v745_v29 = vld [vmem:[#allocation7 + $0xa0] ss:$8 sps:$4 sm:$0xff]   ;;  %v746_v30 = vld [vmem:[#allocation7 + $0xb4] ss:$8 sps:$4 sm:$0xff]  }
  0x57   :  { %v748_v31 = vld [vmem:[#allocation7 + $0xb0] ss:$8 sps:$4 sm:$0xff]   ;;  %v749_v32 = vld [vmem:[#allocation7 + $0xc4] ss:$8 sps:$4 sm:$0xff]   ;;  %v751_v33 = vld [vmem:[#allocation7 + $0xc0] ss:$8 sps:$4 sm:$0xff]  }
  0x58   :  { %v752_v34 = vld [vmem:[#allocation7 + $0xd4] ss:$8 sps:$4 sm:$0xff]   ;;  %v754_v35 = vld [vmem:[#allocation7 + $0xd0] ss:$8 sps:$4 sm:$0xff]   ;;  %v755_v36 = vld [vmem:[#allocation7 + $0xe4] ss:$8 sps:$4 sm:$0xff]  }
  0x59   :  { %379 = vmatpush1.bf16.msra.mxu1 %v721_v13  ;;  %v757_v37 = vld [vmem:[#allocation7 + $0xe0] ss:$8 sps:$4 sm:$0xff]   ;;  %v758_v38 = vld [vmem:[#allocation7 + $0xf4] ss:$8 sps:$4 sm:$0xff]   ;;  %v760_v39 = vld [vmem:[#allocation7 + $0xf0] ss:$8 sps:$4 sm:$0xff]  }
  0x5a   :  { %380 = vmatprep.subr.bf16.mxu1 %v722_v14  ;;  %v761_v40 = vld [vmem:[#allocation8 + $0x40] sm:$0xff]   ;;  %v763_v42 = vld [vmem:[#allocation8 + $0x48] sm:$0xff]   ;;  %v765_v44 = vld [vmem:[#allocation8 + $0x50] sm:$0xff]   ;;  %v89_v52 = vshrl.u32 %v88_v51, 7 }
  0x5b   :  { %v762_v41 = vld [vmem:[#allocation8] sm:$0xff]   ;;  %673 = vmatprep.subr.bf16.mxu0 %v761_v40  ;;  %v764_v43 = vld [vmem:[#allocation8 + $0x8] sm:$0xff]   ;;  %v766_v45 = vld [vmem:[#allocation8 + $0x10] sm:$0xff]  }
  0x5c   :  { %674 = vmatpush3.bf16.msra.mxu0 %v762_v41  ;;  %v767_v46 = vld [vmem:[#allocation8 + $0x58] sm:$0xff]   ;;  %v769_v48 = vld [vmem:[#allocation8 + $0x60] sm:$0xff]   ;;  %v771_v50 = vld [vmem:[#allocation8 + $0x68] sm:$0xff]   ;;  %v90_v53 = vsub.s32 0, %v89_v52  ;;  %v94_v55 = vsub.s32 1, %v89_v52 }
  0x5d   :  { %381 = vmatpush1.bf16.msra.mxu1 %v724_v15  ;;  %675 = vmatprep.subr.bf16.mxu0 %v763_v42  ;;  %v768_v47 = vld [vmem:[#allocation8 + $0x18] sm:$0xff]   ;;  %v770_v49 = vld [vmem:[#allocation8 + $0x20] sm:$0xff]   ;;  %v77_v54 = vld [vmem:[%s1029_s4] sm:$0x3] }
  0x5e   :  { %382 = vmatprep.subr.bf16.mxu1 %v725_v16  ;;  %v91_v56 = vrot.slane %v77_v54, %v90_v53  ;;  %v95_v57 = vrot.slane %v77_v54, %v94_v55  ;;  %v772_v8 = vld [vmem:[#allocation8 + $0x28] sm:$0xff]   ;;  %v773_v9 = vld [vmem:[#allocation8 + $0x70] sm:$0xff]   ;;  %v775_v11 = vld [vmem:[#allocation8 + $0x78] sm:$0xff]  }
  0x5f   :  { %v774_v10 = vld [vmem:[#allocation8 + $0x30] sm:$0xff]   ;;  %v776_v12 = vld [vmem:[#allocation8 + $0x38] sm:$0xff]   ;;  %v78_v13 = vld [vmem:[%s1029_s4 + $0x2] sm:$0x3] }
  0x60   :  { %676 = vmatpush3.bf16.msra.mxu0 %v764_v43  ;;  %v207_v14 = vrot.slane %v78_v13, %v90_v53  ;;  %v211_v15 = vrot.slane %v78_v13, %v94_v55 }
  0x61   :  { %383 = vmatpush1.bf16.msra.mxu1 %v727_v17  ;;  %677 = vmatprep.subr.bf16.mxu0 %v765_v44 }
  0x62   :  { %384 = vmatprep.subr.bf16.mxu1 %v728_v18 }
  0x64   :  { %678 = vmatpush3.bf16.msra.mxu0 %v766_v45 }
  0x65   :  { %385 = vmatpush1.bf16.msra.mxu1 %v730_v19  ;;  %679 = vmatprep.subr.bf16.mxu0 %v767_v46 }
  0x66   :  { %386 = vmatprep.subr.bf16.mxu1 %v731_v20 }
  0x68   :  { %680 = vmatpush3.bf16.msra.mxu0 %v768_v47 }
  0x69   :  { %387 = vmatpush1.bf16.msra.mxu1 %v733_v21  ;;  %681 = vmatprep.subr.bf16.mxu0 %v769_v48 }
  0x6a   :  { %388 = vmatprep.subr.bf16.mxu1 %v734_v22 }
  0x6c   :  { %682 = vmatpush3.bf16.msra.mxu0 %v770_v49 }
  0x6d   :  { %389 = vmatpush1.bf16.msra.mxu1 %v736_v23  ;;  %683 = vmatprep.subr.bf16.mxu0 %v771_v50 }
  0x6e   :  { %390 = vmatprep.subr.bf16.mxu1 %v737_v24 }
  0x70   :  { %684 = vmatpush3.bf16.msra.mxu0 %v772_v8 }
  0x71   :  { %391 = vmatpush1.bf16.msra.mxu1 %v739_v25  ;;  %685 = vmatprep.subr.bf16.mxu0 %v773_v9 }
  0x72   :  { %392 = vmatprep.subr.bf16.mxu1 %v740_v26 }
  0x74   :  { %686 = vmatpush3.bf16.msra.mxu0 %v774_v10 }
  0x75   :  { %393 = vmatpush1.bf16.msra.mxu1 %v742_v27  ;;  %687 = vmatprep.subr.bf16.mxu0 %v775_v11 }
  0x76   :  { %394 = vmatprep.subr.bf16.mxu1 %v743_v28 }
  0x78   :  { %688 = vmatpush3.bf16.msra.mxu0 %v776_v12 }
  0x79   :  { %395 = vmatpush1.bf16.msra.mxu1 %v745_v29 }
  0x7a   :  { %396 = vmatprep.subr.bf16.mxu1 %v746_v30 }
  0x7d   :  { %397 = vmatpush1.bf16.msra.mxu1 %v748_v31  ;;  %v656_v31 = vld [vmem:[%s1029_s4 + $0x4] ss:$0 sm:$0xff] }
  0x7e   :  { %398 = vmatprep.subr.bf16.mxu1 %v749_v32 }
  0x81   :  { %399 = vmatpush1.bf16.msra.mxu1 %v751_v33 }
  0x82   :  { %400 = vmatprep.subr.bf16.mxu1 %v752_v34 }
  0x85   :  { %401 = vmatpush1.bf16.msra.mxu1 %v754_v35 }
  0x86   :  { %402 = vmatprep.subr.bf16.mxu1 %v755_v36 }
  0x89   :  { %403 = vmatpush1.bf16.msra.mxu1 %v757_v37 }
  0x8a   :  { %404 = vmatprep.subr.bf16.mxu1 %v758_v38 }
  0x8d   :  { %405 = vmatpush1.bf16.msra.mxu1 %v760_v39 }
 0x129   :  { %v156_v58 = vpop.f32.mrb[0].mxu0 }
 0x12a   :  { %v157_v59 = vadd.f32 %v156_v58, %v91_v56  ;;  %v158_v60 = vpop.f32.mrb[1].mxu0 }
 0x12b   :  { %v159_v61 = vadd.f32 %v158_v60, %v95_v57  ;;  %v160_v62 = vpop.f32.mrb[2].mxu0 }
 0x12c   :  { %v161_v63 = vadd.f32 %v160_v62, %v91_v56  ;;  %v162_v0 = vpop.f32.mrb[3].mxu0  ;;  %v165_v2 = vmax.f32 %v157_v59, 0.0 }
 0x12d   :  { %v163_v1 = vadd.f32 %v162_v0, %v95_v57  ;;  %v166_v4 = vmax.f32 %v159_v61, 0.0 }
 0x12e   :  { %v167_v3 = vmax.f32 %v161_v63, 0.0 }
 0x12f   :  { %v168_v5 = vmax.f32 %v163_v1, 0.0 }
 0x130   :  { %v169_v6 = vpack.c.bf16 %v167_v3, %v165_v2 }
 0x131   :  { %v170_v7 = vpack.c.bf16 %v168_v5, %v166_v4 }
 0x133   :  { %406 = vmatprep.mubr.bf16.mxu1 %v170_v7 }
 0x134   :  { %407 = vmatmul.mubr.bf16.vlgmr.msra.gmra.mrb[0].mxu1 %v169_v6 }
 0x207   :  { %v408_v16 = vpop.f32.mrb[0].mxu1 }
 0x208   :  { %v409_v17 = vadd.f32 %v408_v16, %v207_v14  ;;  %v410_v18 = vpop.f32.mrb[1].mxu1 }
 0x209   :  { %v411_v19 = vadd.f32 %v410_v18, %v211_v15  ;;  %v412_v20 = vpop.f32.mrb[2].mxu1 }
 0x20a   :  { %v413_v21 = vadd.f32 %v412_v20, %v207_v14  ;;  %v414_v22 = vpop.f32.mrb[3].mxu1  ;;  %v417_v24 = vmax.f32 %v409_v17, 0.0 }
 0x20b   :  { %v415_v23 = vadd.f32 %v414_v22, %v211_v15  ;;  %v418_v26 = vmax.f32 %v411_v19, 0.0 }
 0x20c   :  { %v419_v25 = vmax.f32 %v413_v21, 0.0 }
 0x20d   :  { %v420_v27 = vmax.f32 %v415_v23, 0.0 }
 0x20e   :  { %v421_v28 = vpack.c.bf16 %v419_v25, %v417_v24 }
 0x20f   :  { %v422_v29 = vpack.c.bf16 %v420_v27, %v418_v26 }
 0x211   :  { %589 = vmatprep.mubr.bf16.mxu0 %v422_v29 }
 0x212   :  { %590 = vmatmul.mubr.bf16.vlgmr.msra.gmra.mrb[4].mxu0 %v421_v28 }
 0x2e5   :  { %v689_v30 = vpop.f32.mrb[4].mxu0 }
 0x2e6   :  { %v690_v32 = vpop.f32.mrb[5].mxu0 }
 0x2e7   :  { %v691_v33 = vadd.f32 %v690_v32, %v689_v30  ;;  %v692_v34 = vpop.f32.mrb[6].mxu0 }
 0x2e8   :  { %v693_v35 = vpop.f32.mrb[7].mxu0 }
 0x2e9   :  { %v592_v36 = vadd.f32 %v691_v33, %v656_v31  ;;  %v694_v37 = vadd.f32 %v693_v35, %v692_v34 }
 0x2eb   :  { %598 = vst [vmem:[#allocation10] sm:$0xff] %v592_v36  ;;  %v595_v38 = vadd.f32 %v694_v37, %v656_v31 }
 0x2ed   :  { %599 = vst [vmem:[#allocation10 + $0x8] sm:$0xff] %v595_v38 }
 0x2ee   :  { %604 = vsyncadd [#allocation4], 224  ;;  %s906_s26 = smov [#allocation10]  }
 0x2ef   :  { %s605_s27 = sshll.u32 %s906_s26, 4  ;;  %s606_s27 = int_to_ptr.vmem [resolvable:$true] %s605_s27 }
 0x2f0   :  { %s865_s30 = scalar_lea.vmem %s606_s27, 32  ;;  %s869_s6 = scalar_lea.vmem %s606_s27, 256 }
 0x2f1   :  { %p866_p4 = scmp.ne.s32.totalorder %s606_s27, %s865_s30  ;;  %p870_p5 = scmp.lt.s32.totalorder %s606_s27, %s606_s27 }
 0x2f2   :  { %p871_p6 = scmp.lt.s32.totalorder %s869_s6, %s865_s30 }
 0x2f4   :  { %p872_p7 = por %p871_p6, %p870_p5 }
 0x2f6   :  { %p873_p8 = pnand %p872_p7, %p866_p4 }
 0x2f8   :  { %876 = shalt.err (!%p873_p8)
}
 0x2f9   :  { %s877_s9 = scalar_lea.hbm %s1030_s5, 32 }
 0x2fa   :  { %p878_p9 = scmp.ne.s32.totalorder %s1030_s5, %s877_s9  ;;  %p881_p10 = scmp.lt.u32.totalorder %s877_s9, %s1030_s5 }
 0x2fc   :  { %p883_p11 = pnand %p881_p10, %p878_p9 }
 0x2fe   :  { %886 = shalt.err (!%p883_p11)
}
 0x2ff   :  { %611 = dma.vmem_to_hbm [thread:$0]  %s606_s27, 32, %s1030_s5, [#allocation4], %s899_s17, %s899_s17, %s900_s18  }
 0x300   :  { %893 = dma.done.wait [#allocation4], 256  }
 0x301   :  { %894 = vsyncadd [#allocation4], 4294967040 }
 0x302   :  { %615 = vsyncpa [#allocation3], 1 }
 0x303   :  { %616 = vsyncpa [#allocation6], 1 }
 0x304   :  { %617 = vsyncpa [#allocation9], 1 }
 0x305   :  { %618 = vsyncpa [#allocation4], 1 }

</bundles_post_ra>
